<compile_context>
chip_gen: v7x
topology: tpu7x:2x2x1
jax: 0.10.0
libtpu: 0.0.40
codegen_flags: <defaults>
</compile_context>

<pallas_src>
import functools

import jax
import jax.numpy as jnp
from jax import lax
from jax.experimental import pallas as pl
from jax.experimental.pallas import tpu as pltpu


def _l2norm_kernel(v):
    # matches torch l2norm: v / (1e-6 + v.norm(dim=-1, keepdim=True))
    # (1e-6 is hard-coded in the PyTorch helper, independent of module eps)
    denom = 1e-6 + jnp.sqrt(jnp.sum(v * v, axis=-1, keepdims=True))
    return v * pl.reciprocal(denom, approx=True)


def _fr_kernel(x_ref, inits_ref, w1_ref, b1_ref, w2_ref, b2_ref,
               out_ref, coding_ref, dict_ref,
               *, num_iters, scale, eps, matmul_dtype):
    f32 = jnp.float32
    idn = x_ref[0]                                  # (N, C) f32 (residual path)
    w1 = w1_ref[...]                                # (C, C) matmul_dtype
    w2 = w2_ref[...]                                # (C, C) matmul_dtype
    b1 = b1_ref[...].astype(f32)                    # (1, C) -> broadcasts
    b2 = b2_ref[...].astype(f32)

    # transform1 on tokens and on the dictionary seeds (MXU, f32 accumulation).
    x = jnp.dot(idn.astype(matmul_dtype), w1, preferred_element_type=f32) + b1        # (N, C)
    d0 = jnp.dot(inits_ref[0].astype(matmul_dtype), w1, preferred_element_type=f32) + b1  # (K, C)
    dictionary = _l2norm_kernel(d0)

    # loop-invariant: matmul-dtype copy of the transformed tokens used by every matmul.
    x_mm = x.astype(matmul_dtype)

    coding = None
    for _ in range(num_iters):  # static unroll; num_iters is small
        # fold the scale into the (K,C) dictionary (cheaper than scaling (K,N));
        # trace-time constant, vanishes when scale == 1.0.
        d_s = dictionary * scale if scale != 1.0 else dictionary
        # dots[k, n] = <dictionary_k, x_n>  -- contract last dims (trans_b form,
        # no explicit transpose of x).
        dots = lax.dot_general(
            d_s.astype(matmul_dtype), x_mm,
            dimension_numbers=(((1,), (1,)), ((), ())),
            preferred_element_type=f32)                                    # (K, N)
        # softmax over the dictionary axis (torch dim=1 of (B, K, N)) in f32.
        m = jnp.max(dots, axis=0, keepdims=True)
        e = jnp.exp(dots - m)
        coding = e * pl.reciprocal(jnp.sum(e, axis=0, keepdims=True), approx=True)
        # normalize attention over the token axis (last dim).
        attn = coding + eps
        attn = attn * pl.reciprocal(jnp.sum(attn, axis=-1, keepdims=True), approx=True)
        # dictionary update: attn @ x -> (K, C), then l2norm.
        upd = jnp.dot(attn.astype(matmul_dtype), x_mm, preferred_element_type=f32)
        dictionary = _l2norm_kernel(upd)

    # reconstruction: coding^T @ dictionary -> (N, C); contract first dims
    # (trans_a form, no explicit transpose of coding).
    xr = lax.dot_general(
        coding.astype(matmul_dtype), dictionary.astype(matmul_dtype),
        dimension_numbers=(((0,), (0,)), ((), ())),
        preferred_element_type=f32)                                        # (N, C)
    xr = jnp.maximum(xr, 0.0)
    # transform2
    xr = jnp.dot(xr.astype(matmul_dtype), w2, preferred_element_type=f32) + b2
    # residual + relu (f32)
    out = jnp.maximum(idn + xr, 0.0)

    out_ref[0] = out.astype(out_ref.dtype)
    coding_ref[0] = coding.astype(coding_ref.dtype)
    dict_ref[0] = dictionary.astype(dict_ref.dtype)


def factorization_reconstruction(x, inits, w1, b1, w2, b2,
                                 *, num_iters=1, scale=1.0, eps=1e-6,
                                 matmul_dtype=jnp.bfloat16):
    """x: (B, N, C) f32, inits: (B, K, C) f32, w1/w2: (C, C) stored as (in, out), b: (C,)."""
    if num_iters < 1:
        raise ValueError("num_iters must be >= 1 (coding is undefined otherwise)")

    B, N, C = x.shape
    K = inits.shape[1]

    # Pre-cast MXU-only operands on the host: halves their HBM->VMEM traffic.
    w1_mm = w1.astype(matmul_dtype)
    w2_mm = w2.astype(matmul_dtype)
    inits_mm = inits.astype(matmul_dtype)
    b1_2d = b1.reshape(1, C).astype(jnp.float32)
    b2_2d = b2.reshape(1, C).astype(jnp.float32)

    kernel = functools.partial(_fr_kernel, num_iters=int(num_iters),
                               scale=float(scale), eps=float(eps),
                               matmul_dtype=matmul_dtype)

    out_shapes = (
        jax.ShapeDtypeStruct((B, N, C), x.dtype),      # x out
        jax.ShapeDtypeStruct((B, K, N), jnp.float32),  # coding
        jax.ShapeDtypeStruct((B, K, C), jnp.float32),  # dictionary
    )

    grid_spec = pltpu.PrefetchScalarGridSpec(
        num_scalar_prefetch=0,
        grid=(B,),
        in_specs=[
            pl.BlockSpec((1, N, C), lambda b: (b, 0, 0)),   # x
            pl.BlockSpec((1, K, C), lambda b: (b, 0, 0)),   # inits (matmul dtype)
            pl.BlockSpec((C, C), lambda b: (0, 0)),         # w1 (shared, matmul dtype)
            pl.BlockSpec((1, C), lambda b: (0, 0)),         # b1 (f32)
            pl.BlockSpec((C, C), lambda b: (0, 0)),         # w2 (shared, matmul dtype)
            pl.BlockSpec((1, C), lambda b: (0, 0)),         # b2 (f32)
        ],
        out_specs=[
            pl.BlockSpec((1, N, C), lambda b: (b, 0, 0)),
            pl.BlockSpec((1, K, N), lambda b: (b, 0, 0)),
            pl.BlockSpec((1, K, C), lambda b: (b, 0, 0)),
        ],
    )

    # Size the scoped-VMEM limit to the actual working set (pipeline
    # double-buffers each input/output block) with generous headroom; clamp to
    # the v7x physical VMEM so the same setting is valid on every generation.
    isz = jnp.dtype(matmul_dtype).itemsize
    io_bytes = 2 * (N * C * 4 + K * C * isz + 2 * C * C * isz + 2 * C * 4   # inputs
                    + N * C * 4 + K * N * 4 + K * C * 4)                    # outputs
    tmp_bytes = 4 * N * C * 4 + 4 * K * N * 4 + 4 * K * C * 4               # in-kernel temps
    vmem_limit = int(min(64 * 2**20, max(32 * 2**20, 2 * (io_bytes + tmp_bytes))))

    # Advisory cost hint for the XLA scheduler around the custom call.
    flops_per_batch = (
        2 * N * C * C          # transform1 on tokens
        + 2 * K * C * C        # transform1 on dictionary seeds
        + num_iters * (2 * K * N * C    # dots
                       + 2 * K * N * C)  # dictionary update
        + 2 * K * N * C        # reconstruction
        + 2 * N * C * C)       # transform2
    transc_per_batch = num_iters * (K * N + 2 * K) + (num_iters + 1) * K  # exp + rcp/sqrt-ish
    bytes_accessed = int(
        B * (N * C * 4 + K * C * isz                      # x, inits in
             + N * C * 4 + K * N * 4 + K * C * 4)         # outputs
        + 2 * C * C * isz + 2 * C * 4)                    # shared weights / biases
    cost = pl.CostEstimate(flops=int(B * flops_per_batch),
                           transcendentals=int(B * transc_per_batch),
                           bytes_accessed=bytes_accessed)

    return pl.pallas_call(
        kernel,
        out_shape=out_shapes,
        grid_spec=grid_spec,
        compiler_params=pltpu.CompilerParams(
            dimension_semantics=("parallel",),
            vmem_limit_bytes=vmem_limit),
        cost_estimate=cost,
    )(x, inits_mm, w1_mm, b1_2d, w2_mm, b2_2d)


def _l2norm_ref(v):
    return v / (1e-6 + jnp.sqrt(jnp.sum(v * v, axis=-1, keepdims=True)))


def _reference(x, inits, w1, b1, w2, b2, num_iters=1, scale=1.0, eps=1e-6):
    # pure-JAX f32 reference mirroring the PyTorch module
    xt = x @ w1 + b1
    d = _l2norm_ref(inits @ w1 + b1)
    coding = None
    for _ in range(num_iters):
        dots = jnp.einsum('bid,bjd->bij', d, xt) * scale
        coding = jax.nn.softmax(dots, axis=1)
        attn = coding + eps
        attn = attn / jnp.sum(attn, axis=-1, keepdims=True)
        d = _l2norm_ref(jnp.einsum('bjd,bij->bid', xt, attn))
    rec = jnp.einsum('bij,bid->bjd', coding, d)
    rec = jax.nn.relu(rec)
    rec = rec @ w2 + b2
    return jax.nn.relu(x + rec), coding, d


if __name__ == "__main__":
    B, N, K, C = 2, 16, 8, 32

    key = jax.random.PRNGKey(0)
    kx, ki, kw1, kb1, kw2, kb2 = jax.random.split(key, 6)

    x = jax.random.normal(kx, (B, N, C), dtype=jnp.float32)
    inits = jax.random.normal(ki, (B, K, C), dtype=jnp.float32)

    # deterministic "Linear(c, c)" params, stored as (C_in, C_out)
    bound = 1.0 / (C ** 0.5)
    w1 = jax.random.uniform(kw1, (C, C), jnp.float32, -bound, bound)
    b1 = jax.random.uniform(kb1, (C,), jnp.float32, -bound, bound)
    w2 = jax.random.uniform(kw2, (C, C), jnp.float32, -bound, bound)
    b2 = jax.random.uniform(kb2, (C,), jnp.float32, -bound, bound)

    ref_out, ref_coding, ref_dict = _reference(x, inits, w1, b1, w2, b2,
                                               num_iters=1, scale=1.0, eps=1e-6)

    # f32-MXU path: tolerance only needs to absorb the EUP approx reciprocals.
    out, coding, dictionary = factorization_reconstruction(
        x, inits, w1, b1, w2, b2, num_iters=1, scale=1.0, eps=1e-6,
        matmul_dtype=jnp.float32)
    jax.block_until_ready((out, coding, dictionary))
    assert jnp.allclose(out, ref_out, atol=1e-2, rtol=1e-2)
    assert jnp.allclose(coding, ref_coding, atol=1e-2, rtol=1e-2)
    assert jnp.allclose(dictionary, ref_dict, atol=1e-2, rtol=1e-2)

    # default bf16-MXU path (f32 accumulation): looser tolerance for bf16 inputs.
    out_bf, coding_bf, dict_bf = factorization_reconstruction(
        x, inits, w1, b1, w2, b2, num_iters=1, scale=1.0, eps=1e-6)
    jax.block_until_ready((out_bf, coding_bf, dict_bf))
    assert jnp.allclose(out_bf, ref_out, atol=5e-2, rtol=5e-2)
    assert jnp.allclose(coding_bf, ref_coding, atol=5e-2, rtol=5e-2)
    assert jnp.allclose(dict_bf, ref_dict, atol=5e-2, rtol=5e-2)

    print("KERNEL_OK")
</pallas_src>

<mosaic_0001>
module attributes {stable_mosaic.version = 11 : i64} {
  func.func @_fr_kernel(%arg0: i32, %arg1: memref<1x16x32xf32, #tpu.memory_space<vmem>>, %arg2: memref<1x8x32xf32, #tpu.memory_space<vmem>>, %arg3: memref<32x32xf32, #tpu.memory_space<vmem>>, %arg4: memref<1x32xf32, #tpu.memory_space<vmem>>, %arg5: memref<32x32xf32, #tpu.memory_space<vmem>>, %arg6: memref<1x32xf32, #tpu.memory_space<vmem>>, %arg7: memref<1x16x32xf32, #tpu.memory_space<vmem>>, %arg8: memref<1x8x16xf32, #tpu.memory_space<vmem>>, %arg9: memref<1x8x32xf32, #tpu.memory_space<vmem>>) attributes {dimension_semantics = [#tpu.dimension_semantics<parallel>], iteration_bounds = array<i64: 2>, scalar_prefetch = 0 : i64, scratch_operands = 0 : i64, tpu.core_type = #tpu.core_type<tc>, window_params = [{transform_indices = @transform_0, window_bounds = array<i64: 1, 16, 32>}, {transform_indices = @transform_1, window_bounds = array<i64: 1, 8, 32>}, {pipeline_mode = #tpu.pipeline_mode<synchronous>, transform_indices = @transform_2, window_bounds = array<i64: 32, 32>}, {pipeline_mode = #tpu.pipeline_mode<synchronous>, transform_indices = @transform_3, window_bounds = array<i64: 1, 32>}, {pipeline_mode = #tpu.pipeline_mode<synchronous>, transform_indices = @transform_4, window_bounds = array<i64: 32, 32>}, {pipeline_mode = #tpu.pipeline_mode<synchronous>, transform_indices = @transform_5, window_bounds = array<i64: 1, 32>}, {transform_indices = @transform_6, window_bounds = array<i64: 1, 16, 32>}, {transform_indices = @transform_7, window_bounds = array<i64: 1, 8, 16>}, {transform_indices = @transform_8, window_bounds = array<i64: 1, 8, 32>}]} {
    %c0 = arith.constant 0 : index
    %c0_0 = arith.constant 0 : index
    %c0_1 = arith.constant 0 : index
    %0 = vector.load %arg1[%c0, %c0_0, %c0_1] : memref<1x16x32xf32, #tpu.memory_space<vmem>>, vector<1x16x32xf32>
    %1 = vector.shape_cast %0 : vector<1x16x32xf32> to vector<16x32xf32>
    %c0_2 = arith.constant 0 : index
    %c0_3 = arith.constant 0 : index
    %2 = vector.load %arg3[%c0_2, %c0_3] : memref<32x32xf32, #tpu.memory_space<vmem>>, vector<32x32xf32>
    %c0_4 = arith.constant 0 : index
    %c0_5 = arith.constant 0 : index
    %3 = vector.load %arg5[%c0_4, %c0_5] : memref<32x32xf32, #tpu.memory_space<vmem>>, vector<32x32xf32>
    %c0_6 = arith.constant 0 : index
    %c0_7 = arith.constant 0 : index
    %4 = vector.load %arg4[%c0_6, %c0_7] : memref<1x32xf32, #tpu.memory_space<vmem>>, vector<1x32xf32>
    %c0_8 = arith.constant 0 : index
    %c0_9 = arith.constant 0 : index
    %5 = vector.load %arg6[%c0_8, %c0_9] : memref<1x32xf32, #tpu.memory_space<vmem>>, vector<1x32xf32>
    %cst = arith.constant dense<0.000000e+00> : vector<16x32xf32>
    %6 = tpu.matmul %1, %2, %cst {dimension_numbers = #tpu.dot_dimension_numbers<[1], [0], [0], [1], [0, 0, 1, 1], [], []>} : vector<16x32xf32>, vector<32x32xf32>, vector<16x32xf32> -> vector<16x32xf32>
    %7 = vector.broadcast %4 : vector<1x32xf32> to vector<16x32xf32>
    %8 = arith.addf %6, %7 : vector<16x32xf32>
    %c0_10 = arith.constant 0 : index
    %c0_11 = arith.constant 0 : index
    %c0_12 = arith.constant 0 : index
    %9 = vector.load %arg2[%c0_10, %c0_11, %c0_12] : memref<1x8x32xf32, #tpu.memory_space<vmem>>, vector<1x8x32xf32>
    %10 = vector.shape_cast %9 : vector<1x8x32xf32> to vector<8x32xf32>
    %cst_13 = arith.constant dense<0.000000e+00> : vector<8x32xf32>
    %11 = tpu.matmul %10, %2, %cst_13 {dimension_numbers = #tpu.dot_dimension_numbers<[1], [0], [0], [1], [0, 0, 1, 1], [], []>} : vector<8x32xf32>, vector<32x32xf32>, vector<8x32xf32> -> vector<8x32xf32>
    %12 = vector.broadcast %4 : vector<1x32xf32> to vector<8x32xf32>
    %13 = arith.addf %11, %12 : vector<8x32xf32>
    %14 = arith.mulf %13, %13 : vector<8x32xf32>
    %cst_14 = arith.constant dense<0.000000e+00> : vector<8xf32>
    %15 = vector.multi_reduction <add>, %14, %cst_14 [1] : vector<8x32xf32> to vector<8xf32>
    %16 = vector.shape_cast %15 : vector<8xf32> to vector<8x1xf32>
    %17 = math.sqrt %16 : vector<8x1xf32>
    %cst_15 = arith.constant 9.99999997E-7 : f32
    %18 = vector.broadcast %cst_15 : f32 to vector<8x1xf32>
    %19 = arith.addf %18, %17 : vector<8x1xf32>
    %20 = tpu.reciprocal %19 {approx = true} : vector<8x1xf32> -> vector<8x1xf32>
    %21 = vector.broadcast %20 : vector<8x1xf32> to vector<8x32xf32>
    %22 = arith.mulf %13, %21 : vector<8x32xf32>
    %cst_16 = arith.constant dense<0.000000e+00> : vector<8x16xf32>
    %23 = tpu.matmul %22, %8, %cst_16 {dimension_numbers = #tpu.dot_dimension_numbers<[1], [1], [0], [0], [0, 0, 1, 0], [], []>} : vector<8x32xf32>, vector<16x32xf32>, vector<8x16xf32> -> vector<8x16xf32>
    %cst_17 = arith.constant dense<0xFF800000> : vector<16xf32>
    %24 = vector.multi_reduction <maximumf>, %23, %cst_17 [0] : vector<8x16xf32> to vector<16xf32>
    %25 = vector.shape_cast %24 : vector<16xf32> to vector<1x16xf32>
    %26 = vector.broadcast %25 : vector<1x16xf32> to vector<8x16xf32>
    %27 = arith.subf %23, %26 : vector<8x16xf32>
    %28 = math.exp %27 : vector<8x16xf32>
    %cst_18 = arith.constant dense<0.000000e+00> : vector<16xf32>
    %29 = vector.multi_reduction <add>, %28, %cst_18 [0] : vector<8x16xf32> to vector<16xf32>
    %30 = vector.shape_cast %29 : vector<16xf32> to vector<1x16xf32>
    %31 = tpu.reciprocal %30 {approx = true} : vector<1x16xf32> -> vector<1x16xf32>
    %32 = vector.broadcast %31 : vector<1x16xf32> to vector<8x16xf32>
    %33 = arith.mulf %28, %32 : vector<8x16xf32>
    %cst_19 = arith.constant 9.99999997E-7 : f32
    %34 = vector.broadcast %cst_19 : f32 to vector<8x16xf32>
    %35 = arith.addf %33, %34 : vector<8x16xf32>
    %cst_20 = arith.constant dense<0.000000e+00> : vector<8xf32>
    %36 = vector.multi_reduction <add>, %35, %cst_20 [1] : vector<8x16xf32> to vector<8xf32>
    %37 = vector.shape_cast %36 : vector<8xf32> to vector<8x1xf32>
    %38 = tpu.reciprocal %37 {approx = true} : vector<8x1xf32> -> vector<8x1xf32>
    %39 = vector.broadcast %38 : vector<8x1xf32> to vector<8x16xf32>
    %40 = arith.mulf %35, %39 : vector<8x16xf32>
    %cst_21 = arith.constant dense<0.000000e+00> : vector<8x32xf32>
    %41 = tpu.matmul %40, %8, %cst_21 {dimension_numbers = #tpu.dot_dimension_numbers<[1], [0], [0], [1], [0, 0, 1, 1], [], []>} : vector<8x16xf32>, vector<16x32xf32>, vector<8x32xf32> -> vector<8x32xf32>
    %42 = arith.mulf %41, %41 : vector<8x32xf32>
    %cst_22 = arith.constant dense<0.000000e+00> : vector<8xf32>
    %43 = vector.multi_reduction <add>, %42, %cst_22 [1] : vector<8x32xf32> to vector<8xf32>
    %44 = vector.shape_cast %43 : vector<8xf32> to vector<8x1xf32>
    %45 = math.sqrt %44 : vector<8x1xf32>
    %cst_23 = arith.constant 9.99999997E-7 : f32
    %46 = vector.broadcast %cst_23 : f32 to vector<8x1xf32>
    %47 = arith.addf %46, %45 : vector<8x1xf32>
    %48 = tpu.reciprocal %47 {approx = true} : vector<8x1xf32> -> vector<8x1xf32>
    %49 = vector.broadcast %48 : vector<8x1xf32> to vector<8x32xf32>
    %50 = arith.mulf %41, %49 : vector<8x32xf32>
    %cst_24 = arith.constant dense<0.000000e+00> : vector<16x32xf32>
    %51 = tpu.matmul %33, %50, %cst_24 {dimension_numbers = #tpu.dot_dimension_numbers<[0], [0], [1], [1], [0, 1, 1, 1], [], []>} : vector<8x16xf32>, vector<8x32xf32>, vector<16x32xf32> -> vector<16x32xf32>
    %cst_25 = arith.constant 0.000000e+00 : f32
    %52 = vector.broadcast %cst_25 : f32 to vector<16x32xf32>
    %53 = arith.maximumf %51, %52 : vector<16x32xf32>
    %cst_26 = arith.constant dense<0.000000e+00> : vector<16x32xf32>
    %54 = tpu.matmul %53, %3, %cst_26 {dimension_numbers = #tpu.dot_dimension_numbers<[1], [0], [0], [1], [0, 0, 1, 1], [], []>} : vector<16x32xf32>, vector<32x32xf32>, vector<16x32xf32> -> vector<16x32xf32>
    %55 = vector.broadcast %5 : vector<1x32xf32> to vector<16x32xf32>
    %56 = arith.addf %54, %55 : vector<16x32xf32>
    %57 = arith.addf %1, %56 : vector<16x32xf32>
    %cst_27 = arith.constant 0.000000e+00 : f32
    %58 = vector.broadcast %cst_27 : f32 to vector<16x32xf32>
    %59 = arith.maximumf %57, %58 : vector<16x32xf32>
    %c0_28 = arith.constant 0 : index
    %c0_29 = arith.constant 0 : index
    %c0_30 = arith.constant 0 : index
    %60 = vector.load %arg7[%c0_28, %c0_29, %c0_30] : memref<1x16x32xf32, #tpu.memory_space<vmem>>, vector<1x16x32xf32>
    %61 = vector.shape_cast %60 : vector<1x16x32xf32> to vector<16x32xf32>
    %62 = vector.shape_cast %59 : vector<16x32xf32> to vector<1x16x32xf32>
    tpu.vector_store %arg7[%c0_28, %c0_29, %c0_30], %62 {strides = array<i32>} : memref<1x16x32xf32, #tpu.memory_space<vmem>>, vector<1x16x32xf32>,
    %c0_31 = arith.constant 0 : index
    %c0_32 = arith.constant 0 : index
    %c0_33 = arith.constant 0 : index
    %63 = vector.load %arg8[%c0_31, %c0_32, %c0_33] : memref<1x8x16xf32, #tpu.memory_space<vmem>>, vector<1x8x16xf32>
    %64 = vector.shape_cast %63 : vector<1x8x16xf32> to vector<8x16xf32>
    %65 = vector.shape_cast %33 : vector<8x16xf32> to vector<1x8x16xf32>
    tpu.vector_store %arg8[%c0_31, %c0_32, %c0_33], %65 {strides = array<i32>} : memref<1x8x16xf32, #tpu.memory_space<vmem>>, vector<1x8x16xf32>,
    %c0_34 = arith.constant 0 : index
    %c0_35 = arith.constant 0 : index
    %c0_36 = arith.constant 0 : index
    %66 = vector.load %arg9[%c0_34, %c0_35, %c0_36] : memref<1x8x32xf32, #tpu.memory_space<vmem>>, vector<1x8x32xf32>
    %67 = vector.shape_cast %66 : vector<1x8x32xf32> to vector<8x32xf32>
    %68 = vector.shape_cast %50 : vector<8x32xf32> to vector<1x8x32xf32>
    tpu.vector_store %arg9[%c0_34, %c0_35, %c0_36], %68 {strides = array<i32>} : memref<1x8x32xf32, #tpu.memory_space<vmem>>, vector<1x8x32xf32>,
    return
  }
  func.func @transform_0(%arg0: i32) -> (i32, i32, i32) {
    %c0_i32 = arith.constant 0 : i32
    %c0_i32_0 = arith.constant 0 : i32
    %c0_i32_1 = arith.constant 0 : i32
    return %arg0, %c0_i32, %c0_i32_0 : i32, i32, i32
  }
  func.func @transform_1(%arg0: i32) -> (i32, i32, i32) {
    %c0_i32 = arith.constant 0 : i32
    %c0_i32_0 = arith.constant 0 : i32
    %c0_i32_1 = arith.constant 0 : i32
    return %arg0, %c0_i32, %c0_i32_0 : i32, i32, i32
  }
  func.func @transform_2(%arg0: i32) -> (i32, i32) {
    %c0_i32 = arith.constant 0 : i32
    %c0_i32_0 = arith.constant 0 : i32
    %c0_i32_1 = arith.constant 0 : i32
    return %c0_i32, %c0_i32_0 : i32, i32
  }
  func.func @transform_3(%arg0: i32) -> (i32, i32) {
    %c0_i32 = arith.constant 0 : i32
    %c0_i32_0 = arith.constant 0 : i32
    %c0_i32_1 = arith.constant 0 : i32
    return %c0_i32, %c0_i32_0 : i32, i32
  }
  func.func @transform_4(%arg0: i32) -> (i32, i32) {
    %c0_i32 = arith.constant 0 : i32
    %c0_i32_0 = arith.constant 0 : i32
    %c0_i32_1 = arith.constant 0 : i32
    return %c0_i32, %c0_i32_0 : i32, i32
  }
  func.func @transform_5(%arg0: i32) -> (i32, i32) {
    %c0_i32 = arith.constant 0 : i32
    %c0_i32_0 = arith.constant 0 : i32
    %c0_i32_1 = arith.constant 0 : i32
    return %c0_i32, %c0_i32_0 : i32, i32
  }
  func.func @transform_6(%arg0: i32) -> (i32, i32, i32) {
    %c0_i32 = arith.constant 0 : i32
    %c0_i32_0 = arith.constant 0 : i32
    %c0_i32_1 = arith.constant 0 : i32
    return %arg0, %c0_i32, %c0_i32_0 : i32, i32, i32
  }
  func.func @transform_7(%arg0: i32) -> (i32, i32, i32) {
    %c0_i32 = arith.constant 0 : i32
    %c0_i32_0 = arith.constant 0 : i32
    %c0_i32_1 = arith.constant 0 : i32
    return %arg0, %c0_i32, %c0_i32_0 : i32, i32, i32
  }
  func.func @transform_8(%arg0: i32) -> (i32, i32, i32) {
    %c0_i32 = arith.constant 0 : i32
    %c0_i32_0 = arith.constant 0 : i32
    %c0_i32_1 = arith.constant 0 : i32
    return %arg0, %c0_i32, %c0_i32_0 : i32, i32, i32
  }
}

</mosaic_0001>

<bundles_post_ra>
// kernel: tpu_custom_call.1
= control target key start
LH: loop header
LB: loop body
LE: loop exit
PB: predicated region body
PF: predicated region fallthrough
CT: control target
= control target key end

     0   :  { %s2196_s0 = inlined_call_operand.hbm [shape: f32[2,16,32], index: 0, kind: input, shape index: {}]   ;;  %s2197_s1 = inlined_call_operand.hbm [shape: f32[2,8,32], index: 1, kind: input, shape index: {}]   ;;  %s2198_s2 = inlined_call_operand.hbm [shape: f32[32,32], index: 2, kind: input, shape index: {}]   ;;  %s2199_s3 = inlined_call_operand.vmem [shape: f32[1,32], index: 3, kind: input, shape index: {}]   ;;  %s2200_s4 = inlined_call_operand.hbm [shape: f32[32,32], index: 4, kind: input, shape index: {}]   ;;  %s2201_s5 = inlined_call_operand.vmem [shape: f32[1,32], index: 5, kind: input, shape index: {}]   ;;  %s2202_s6 = inlined_call_operand.hbm [shape: f32[2,16,32], index: 6, kind: output, shape index: {0}]   ;;  %s2203_s7 = inlined_call_operand.hbm [shape: f32[2,8,16], index: 7, kind: output, shape index: {1}]   ;;  %s2204_s8 = inlined_call_operand.hbm [shape: f32[2,8,32], index: 8, kind: output, shape index: {2}]  }
   0x1   :  { %2215 = sst [smem:[#allocation23_spill]] %s2196_s0 }
   0x2   :  { %2216 = sst [smem:[#allocation24_spill]] %s2198_s2 }
   0x3   :  { %2217 = sst [smem:[#allocation25_spill]] %s2200_s4 }
   0x4   :  { %14 = vsyncpa [#allocation3], 0 }
   0x5   :  { %16 = vsyncpa [#allocation3 + $0x1], 0 }
   0x6   :  { %17 = vsyncpa [#allocation6], 0 }
   0x7   :  { %19 = vsyncpa [#allocation6 + $0x1], 0 }
   0x8   :  { %20 = vsyncpa [#allocation9], 0 }
   0x9   :  { %21 = vsyncpa [#allocation4], 0 }
   0xa   :  { %23 = vsyncpa [#allocation4 + $0x1], 0 }
   0xb   :  { %24 = vsyncpa [#allocation12], 0 }
   0xc   :  { %26 = vsyncpa [#allocation12 + $0x1], 0  ;;  %s1792_s27 = smov 0   ;;  %s1794_s28 = smov 0  }
   0xd   :  { %s1796_s29 = smov 0   ;;  %s1798_s30 = smov 0  }
   0xe LB: > { %2218 = sst [smem:[#allocation20_spill]] %s1727_s29  ;;  %s1813_s9 = sadd.s32 4294967295, %s1731_s30   ;;  %s1731_s30 = sphi %s1798_s30, %s2244_s30   ;;  %s1727_s29 = sphi %s1796_s29, %s2246_s29   ;;  %s1723_s28 = sphi %s1794_s28, %s2248_s28   ;;  %s1719_s27 = sphi %s1792_s27, %s2247_s27  }
   0xf   : > { %s2206_s10 = sadd.s32 4294967294, %s1731_s30   ;;  %p52_p0 = scmp.ne.s32.totalorder %s1723_s28, %s1719_s27 }
  0x10   : > { %p2205_p1 = scmp.eq.s32.totalorder %s1813_s9, 0  ;;  %p192_p3 = scmp.eq.s32.totalorder %s2206_s10, 1 }
  0x11   : > { %p1226_p5 = scmp.ge.s32.totalorder %s1731_s30, 1  ;;  %p251_p7 = scmp.lt.s32.totalorder %s1731_s30, 3 }
  0x12   : > { %p1824_p4 = por %p2205_p1, %p52_p0  ;;  %p1829_p6 = por %p192_p3, %p52_p0 }
  0x13   : > { %p1834_p8 = pnand %p1226_p5, %p251_p7  ;;  %s1733_s14 = smov [#allocation7]  }
  0x14   : > { %s2219_s11 = scalar_select %p1824_p4, 1, 0 }
  0x15   : > { %s2220_s12 = scalar_select %p1829_p6, 1, 0 }
  0x16   : > { %s2221_s13 = scalar_select %p1834_p8, 1, 0 }
  0x17   : > { %s263_s15 = sshll.u32 %s1733_s14, 4  ;;  %p1392_p9 = pneg %p1834_p8  ;;  %s1838_s15 = int_to_ptr.vmem [resolvable:$true] %s263_s15 }
  0x18   : > { %s1734_s17 = smov [#allocation8]   ;;  %s2223_s2 = sld [smem:[#allocation24_spill]] }
  0x19   : > { %p1845_p11 = pnand %p1392_p9, %p2205_p1  ;;  %s279_s18 = sshll.u32 %s1734_s17, 4  ;;  %s1849_s18 = int_to_ptr.vmem [resolvable:$true] %s279_s18 }
  0x1b   : > { %p1479_p13 = pneg %p1845_p11 }
  0x1e   : > { %s1477_s21 = scalar_lea.hbm %s2223_s2, 512 }
  0x1f   : > { %p1478_p12 = scmp.ne.s32.totalorder %s2223_s2, %s1477_s21  ;;  %p1484_p5 = scmp.lt.u32.totalorder %s1477_s21, %s2223_s2 }
  0x21   : > { %p1480_p0 = pnand %p1479_p13, %p1478_p12 }
  0x23   : > { %p1481_p3 = pneg %p1480_p0 }
  0x25   : > { %p1486_p7 = pnand %p1484_p5, %p1481_p3 }
  0x27   : > { %1489 = shalt.err (!%p1486_p7)
}
  0x28   : > { %s1490_s26 = scalar_lea.vmem %s1838_s15, 512  ;;  %p1498_p2 = scmp.lt.s32.totalorder %s1838_s15, %s1838_s15 }
  0x29   : > { %p1491_p9 = scmp.ne.s32.totalorder %s1838_s15, %s1490_s26  ;;  %p1499_p12 = scmp.lt.s32.totalorder %s1490_s26, %s1490_s26 }
  0x2b   : > { %p1493_p10 = pnand %p1491_p9, %p1479_p13  ;;  %p1500_p0 = por %p1499_p12, %p1498_p2 }
  0x2d   : > { %p1494_p1 = pneg %p1493_p10 }
  0x2f   : > { %p1501_p6 = pnand %p1500_p0, %p1494_p1 }
  0x31   : > { %1504 = shalt.err (!%p1501_p6)
}
  0x32   : > { %s2207_s14 = smov 128   ;;  %s2208_s17 = smov 8  }
  0x33   : > { %1395 = dma.hbm_to_vmem [thread:$0]  (!%p1845_p11), %s2223_s2, 512, %s1838_s15, [#allocation6], %s2207_s14, %s2207_s14, %s2208_s17  }
  0x34   : > { %s2224_s4 = sld [smem:[#allocation25_spill]] }
  0x3a   : > { %s1505_s23 = scalar_lea.hbm %s2224_s4, 512 }
  0x3b   : > { %p1506_p1 = scmp.ne.s32.totalorder %s2224_s4, %s1505_s23  ;;  %p1512_p10 = scmp.lt.u32.totalorder %s1505_s23, %s2224_s4 }
  0x3d   : > { %p1508_p2 = pnand %p1506_p1, %p1479_p13 }
  0x3f   : > { %p1509_p6 = pneg %p1508_p2 }
  0x41   : > { %p1514_p3 = pnand %p1512_p10, %p1509_p6 }
  0x43   : > { %1517 = shalt.err (!%p1514_p3)
}
  0x44   : > { %s1518_s15 = scalar_lea.vmem %s1849_s18, 512  ;;  %p1526_p12 = scmp.lt.s32.totalorder %s1849_s18, %s1849_s18 }
  0x45   : > { %p1519_p5 = scmp.ne.s32.totalorder %s1849_s18, %s1518_s15  ;;  %p1527_p0 = scmp.lt.s32.totalorder %s1518_s15, %s1518_s15 }
  0x47   : > { %p1521_p7 = pnand %p1519_p5, %p1479_p13  ;;  %p1528_p1 = por %p1527_p0, %p1526_p12 }
  0x49   : > { %p1522_p9 = pneg %p1521_p7 }
  0x4b   : > { %p1529_p2 = pnand %p1528_p1, %p1522_p9 }
  0x4d   : > { %1532 = shalt.err (!%p1529_p2)
}
  0x4e   : > { %1398 = dma.hbm_to_vmem [thread:$0]  (!%p1845_p11), %s2224_s4, 512, %s1849_s18, [#allocation9], %s2207_s14, %s2207_s14, %s2208_s17  }
  0x4f   : > { %s1910_s16 = sadd.s32 1, %s1731_s30   ;;  %s39_s20 = sadd.s32 1, %s1727_s29 }
  0x50   : > { %2225 = sst [smem:[#allocation21_spill]] %s1910_s16  ;;  %s36_s21 = ssub.s32 %s1731_s30, %s1910_s16 }
  0x51   : > { %p46_p13 = scmp.ne.s32.totalorder %s1727_s29, %s1723_s28  ;;  %p37_p6 = scmp.eq.s32.totalorder %s36_s21, 0 }
  0x52   : > { %p47_p10 = scmp.eq.s32.totalorder %s1731_s30, 0  ;;  %p2226_p3 = scmp.eq.s32.totalorder %s1813_s9, 1 }
  0x53   : > { %p1418_p7 = scmp.lt.s32.totalorder %s1731_s30, 2  ;;  %s1929_s24 = sand.u32 1, %s1727_s29  }
  0x54   : > { %p1920_p5 = por %p2226_p3, %p46_p13  ;;  %p48_p9 = por %p47_p10, %p46_p13 }
  0x55   : > { %s1926_s23 = scalar_select %p37_p6, %s1727_s29, %s39_s20  }
  0x56   : > { %s2227_s22 = scalar_select %p1920_p5, 1, 0 }
  0x57   : > { %2228 = sst [smem:[#allocation22_spill]] %s1926_s23  ;;  %s1230_s18 = sshll.u32 %s1929_s24, 4 }
  0x58   : > { %s1265_s25 = sshll.u32 %s1731_s30, 8  ;;  %s2229_s0 = sld [smem:[#allocation23_spill]] }
  0x59   : > { %s300_s19 = scalar_lea.vmem [#allocation2], %s1230_s18  ;;  %p1940_p11 = pnand %p1418_p7, %p48_p9 }
  0x5a   : > { %s307_s20 = sshll.u32 %s300_s19, 4  ;;  %s1233_s17 = sshll.u32 %s1929_s24, 3  ;;  %s1938_s20 = int_to_ptr.vmem [resolvable:$true] %s307_s20 }
  0x5b   : > { %s297_s2 = scalar_lea.sflag [#allocation3], %s1929_s24  ;;  %p1535_p0 = pneg %p1940_p11 }
  0x5e   : > { %s1936_s10 = scalar_lea.hbm %s2229_s0, %s1265_s25  ;;  %s1538_s15 = scalar_lea.hbm %s2229_s0, 512 }
  0x5f   : > { %s1533_s26 = scalar_lea.hbm %s1936_s10, 256  ;;  %p1539_p13 = scmp.lt.u32.totalorder %s1936_s10, %s2229_s0 }
  0x60   : > { %p1534_p12 = scmp.ne.s32.totalorder %s1936_s10, %s1533_s26  ;;  %p1540_p6 = scmp.lt.u32.totalorder %s1538_s15, %s1533_s26 }
  0x61   : > { %p1542_p3 = scmp.lt.u32.totalorder %s1533_s26, %s1936_s10 }
  0x62   : > { %p1536_p1 = pnand %p1535_p0, %p1534_p12  ;;  %p1541_p10 = por %p1540_p6, %p1539_p13 }
  0x64   : > { %p1537_p2 = pneg %p1536_p1  ;;  %p1543_p7 = por %p1542_p3, %p1541_p10 }
  0x66   : > { %p1544_p9 = pnand %p1543_p7, %p1537_p2 }
  0x68   : > { %1547 = shalt.err (!%p1544_p9)
}
  0x69   : > { %s1548_s14 = scalar_lea.vmem %s1938_s20, 256  ;;  %s1737_s18 = smov [#allocation2]  }
  0x6a   : > { %p1549_p12 = scmp.ne.s32.totalorder %s1938_s20, %s1548_s14  ;;  %s1553_s25 = sshll.u32 %s1737_s18, 4  ;;  %s1554_s25 = int_to_ptr.vmem [resolvable:$false] %s1553_s25 }
  0x6b   : > { %s1555_s4 = scalar_lea.vmem %s1554_s25, 512  ;;  %p1556_p4 = scmp.lt.s32.totalorder %s1938_s20, %s1554_s25 }
  0x6c   : > { %p1551_p1 = pnand %p1549_p12, %p1535_p0  ;;  %p1557_p13 = scmp.lt.s32.totalorder %s1555_s4, %s1548_s14 }
  0x6e   : > { %p1552_p5 = pneg %p1551_p1  ;;  %p1558_p6 = por %p1557_p13, %p1556_p4 }
  0x70   : > { %p1559_p10 = pnand %p1558_p6, %p1552_p5 }
  0x72   : > { %1562 = shalt.err (!%p1559_p10)
}
  0x73   : > { %s2231_s26 = smov 8   ;;  %s2232_s15 = smov 128  }
  0x74   : > { %1402 = dma.hbm_to_vmem [thread:$0]  (!%p1940_p11), %s1936_s10, 256, %s1938_s20, %s297_s2, %s2232_s15, %s2232_s15, %s2231_s26  }
  0x75   : > { %s1234_s19 = sshll.u32 %s1731_s30, 7  ;;  %s321_s4 = scalar_lea.vmem [#allocation5], %s1233_s17 }
  0x76   : > { %s1981_s25 = scalar_lea.hbm %s2197_s1, %s1234_s19  ;;  %s328_s0 = sshll.u32 %s321_s4, 4  ;;  %s329_s0 = int_to_ptr.vmem [resolvable:$true] %s328_s0 }
  0x77   : > { %s2233_s23 = sand.u32 1, %s1731_s30   ;;  %s1563_s16 = scalar_lea.hbm %s1981_s25, 128 }
  0x78   : > { %s318_s29 = scalar_lea.sflag [#allocation6], %s2233_s23  ;;  %p1564_p4 = scmp.ne.s32.totalorder %s1981_s25, %s1563_s16 }
  0x79   : > { %s1568_s20 = scalar_lea.hbm %s2197_s1, 256  ;;  %p1569_p3 = scmp.lt.u32.totalorder %s1981_s25, %s2197_s1 }
  0x7a   : > { %p1566_p5 = pnand %p1564_p4, %p1535_p0  ;;  %p1570_p7 = scmp.lt.u32.totalorder %s1568_s20, %s1563_s16 }
  0x7b   : > { %p1572_p12 = scmp.lt.u32.totalorder %s1563_s16, %s1981_s25 }
  0x7c   : > { %p1567_p2 = pneg %p1566_p5  ;;  %p1571_p9 = por %p1570_p7, %p1569_p3 }
  0x7e   : > { %p1573_p1 = por %p1572_p12, %p1571_p9 }
  0x80   : > { %p1574_p13 = pnand %p1573_p1, %p1567_p2 }
  0x82   : > { %1577 = shalt.err (!%p1574_p13)
}
  0x83   : > { %s1578_s17 = scalar_lea.vmem %s329_s0, 128  ;;  %s1738_s23 = smov [#allocation5]  }
  0x84   : > { %p1579_p6 = scmp.ne.s32.totalorder %s329_s0, %s1578_s17  ;;  %s1583_s15 = sshll.u32 %s1738_s23, 4  ;;  %s1584_s15 = int_to_ptr.vmem [resolvable:$false] %s1583_s15 }
  0x85   : > { %s1585_s19 = scalar_lea.vmem %s1584_s15, 256  ;;  %p1586_p5 = scmp.lt.s32.totalorder %s329_s0, %s1584_s15 }
  0x86   : > { %p1581_p10 = pnand %p1579_p6, %p1535_p0  ;;  %p1587_p8 = scmp.lt.s32.totalorder %s1585_s19, %s1578_s17 }
  0x88   : > { %p1582_p4 = pneg %p1581_p10  ;;  %p1588_p3 = por %p1587_p8, %p1586_p5 }
  0x8a   : > { %p1589_p7 = pnand %p1588_p3, %p1582_p4 }
  0x8c   : > { %1592 = shalt.err (!%p1589_p7)
}
  0x8d   : > { %1405 = dma.hbm_to_vmem [thread:$0]  (!%p1940_p11), %s1981_s25, 128, %s329_s0, %s318_s29  }
  0x8e   : > { %p2234_p2 = scmp.ne.s32.totalorder %s2221_s13, 0 }
  0x8f   : > { %s2009_s16 = sand.u32 (!%p2234_p2), 1, %s1723_s28   ;;  %p2235_p8 = scmp.ne.s32.totalorder (!%p2234_p2), %s2219_s11, 0 }
  0x90   : > { %337 = sbr.rel (%p2234_p2) target bundleno = 1835 (0x72b), region = 44  ;;  %s1236_s18 = sshll.u32 (!%p2234_p2), %s2009_s16, 4 }
  0x91   : > { %s340_s14 = scalar_lea.sflag (!%p2234_p2), [#allocation3], %s2009_s16  ;;  %s2015_s4 = scalar_lea.vmem (!%p2234_p2), [#allocation2], %s1236_s18 }
  0x97   : > { %1694 = dma.done.wait (%p2235_p8), %s340_s14, 256  }
  0x98   : > { %1696 = vsyncadd (%p2235_p8), %s340_s14, 4294967040  ;;  %s348_s0 = sand.u32 1, %s1813_s9   ;;  %s2023_s29 = sshll.u32 %s2009_s16, 3 }
  0x99   : > { %s349_s13 = scalar_lea.sflag [#allocation6], %s348_s0  ;;  %s352_s21 = scalar_lea.vmem [#allocation5], %s2023_s29 }
  0x9a   : > { %1698 = dma.done.wait (%p2235_p8), %s349_s13, 128  }
  0x9b   : > { %1700 = vsyncadd (%p2235_p8), %s349_s13, 4294967168  ;;  %p2236_p11 = scmp.eq.s32.totalorder %s1813_s9, 0 }
  0x9d   : > { %1702 = dma.done.wait (%p2236_p11), [#allocation6], 512   ;;  %p2237_p0 = pmov %p2236_p11 }
  0x9f   : > { %1704 = vsyncadd (%p2237_p0), [#allocation6], 4294966784  ;;  %p2238_p9 = pmov %p2237_p0 }
  0xa0   : > { %p2239_p12 = pmov %p2237_p0 }
  0xa1   : > { %1706 = dma.done.wait (%p2238_p9), [#allocation9], 512  }
  0xa2   : > { %1708 = vsyncadd (%p2239_p12), [#allocation9], 4294966784  ;;  %v1739_v0 = vmov 0.0|0.0   ;;  %vm1740_vm0 = vmmov 0   ;;  %v1741_v1 = vmov 0.0   ;;  %v410_v2 = vld [vmem:[#allocation7] sm:$0xff] }
  0xa3   : > { %1353 = vmatprep.subr.bf16.mxu1 %v1739_v0  ;;  %1312 = vmatprep.mubr.msk.f32.mxu1 %vm1740_vm0, %v1741_v1  ;;  %v411_v3 = vld [vmem:[#allocation7 + $0x8] sm:$0xff]  ;;  %v412_v4 = vld [vmem:[#allocation7 + $0x10] sm:$0xff]  ;;  %v413_v6 = vld [vmem:[#allocation7 + $0x18] sm:$0xff]  ;;  %vm426_vm1 = vcmask 261120   ;;  %vm675_vm5 = vcmask 130048   ;;  %s400_s2 = scalar_lea.vmem [#allocation11], %s2023_s29 }
  0xa4   : > { %v1345_v5 = vpack.c.bf16 %v411_v3, %v410_v2  ;;  %v2042_v7 = vld [vmem:[%s2015_s4] sm:$0xff]  ;;  %v1349_v8 = vpack.c.bf16 %v413_v6, %v412_v4  ;;  %v2047_v10 = vld [vmem:[%s2015_s4 + $0x8] sm:$0xff]  ;;  %vm1361_vm2 = vmpackc.low %vm426_vm1, %vm426_vm1  ;;  %s407_s10 = scalar_lea.vmem [#allocation13], %s2023_s29  ;;  %vm820_vm8 = vcmask 64512   ;;  %s1261_s20 = sshll.u32 %s1813_s9, 7 }
  0xa5   : > { %1301 = vmatprep.mubr.msk.f32.mxu0 %vm426_vm1, %v2042_v7  ;;  %v508_v9 = vld [vmem:[%s352_s21] sm:$0xff]  ;;  %v414_v61 = vld [vmem:[#allocation8] sm:$0xff]  ;;  %v415_v62 = vld [vmem:[#allocation8 + $0x8] sm:$0xff]  ;;  %s1039_s24 = sshll.u32 %s400_s2, 4  ;;  %s2084_s23 = scalar_lea.hbm %s2203_s7, %s1261_s20  ;;  %s1040_s24 = int_to_ptr.vmem [resolvable:$true] %s1039_s24 }
  0xa6   : > { %1355 = vmatpush3.bf16.msra.mxu1 %v1345_v5  ;;  %1346 = vmatprep.subr.bf16.mxu0 %v1345_v5  ;;  %v1243_v11 = vld [vmem:[%s2199_s3] ss:$0 sm:$0xff]  ;;  %v1366_v63 = vpack.c.bf16 %v415_v62, %v414_v61  ;;  %s2088_s15 = scalar_lea.sflag [#allocation12], %s348_s0  ;;  %s1593_s19 = scalar_lea.vmem %s1040_s24, 128 }
  0xa7   : > { %1356 = vmatprep.subr.bf16.mxu1 %v1739_v0  ;;  %1348 = vmatpush3.bf16.msra.mxu0 %v1345_v5  ;;  %p1594_p1 = scmp.ne.s32.totalorder %s1040_s24, %s1593_s19  ;;  %p2240_p13 = scmp.ne.s32.totalorder %s2227_s22, 0 }
  0xa8   : > { %1350 = vmatprep.subr.bf16.mxu0 %v1349_v8  ;;  %s1742_s14 = smov [#allocation11]  }
  0xa9   : > { %p1595_p6 = pnand %p1594_p1, %p2240_p13  ;;  %s1597_s4 = sshll.u32 %s1742_s14, 4  ;;  %s1598_s4 = int_to_ptr.vmem [resolvable:$false] %s1597_s4 }
  0xaa   : > { %1358 = vmatpush3.bf16.msra.mxu1 %v1349_v8  ;;  %s1599_s13 = scalar_lea.vmem %s1598_s4, 256  ;;  %p1600_p4 = scmp.lt.s32.totalorder %s1040_s24, %s1598_s4 }
  0xab   : > { %1352 = vmatpush3.bf16.msra.mxu0 %v1349_v8  ;;  %1363 = vmatprep.subr.bf16.mxu1 %v1739_v0  ;;  %p1596_p10 = pneg %p1595_p6  ;;  %p1601_p5 = scmp.lt.s32.totalorder %s1599_s13, %s1593_s19 }
  0xac   : > { %1359 = vmatprep.subr.bf16.mxu0 %v1739_v0 }
  0xad   : > { %1313 = vmatmul.mubr.msk.f32.vlgmr.msra.gmra.mrb[0].mxu1 %vm426_vm1, %v508_v9  ;;  %p1602_p3 = por %p1601_p5, %p1600_p4 }
  0xae   : > { %1302 = vmatmul.mubr.msk.f32.vlgmr.msra.gmra.mrb[0].mxu0 %vm426_vm1, %v2047_v10  ;;  %1326 = vmatprep.mubr.msk.f32.mxu1 %vm1740_vm0, %v1741_v1 }
  0xaf   : > { %1319 = vmatprep.mubr.msk.f32.mxu0 %vm1740_vm0, %v1741_v1  ;;  %p1603_p7 = pnand %p1602_p3, %p1596_p10 }
 0x180   : > { %v578_v12 = vpop.f32.mrb[0].mxu1 }
 0x181   : > { %v579_v13 = vadd.f32 %v1243_v11, %v578_v12  ;;  %v1314_v14 = vpop.f32.mrb[1].mxu1  ;;  %v1303_v17 = vpop.f32.mrb[0].mxu0 }
 0x182   : > { %v505_v18 = vadd.f32 %v1303_v17, %v1243_v11  ;;  %v499_v19 = vpop.f32.mrb[1].mxu0  ;;  %v417_v14 = vld [vmem:[#allocation8 + $0x18] sm:$0xff] }
 0x183   : > { %v582_v15 = vmul.f32 %v579_v13, %v579_v13  ;;  %v500_v20 = vadd.f32 %v1243_v11, %v499_v19 }
 0x185   : > { %v583_v16 = vsel %vm426_vm1, %v582_v15, 0.0  ;;  %v1360_v21 = vpack.c.bf16 %v505_v18, %v500_v20 }
 0x186   : > { %584 = vadd.xlane.f32.xlu0 %v583_v16 }
 0x187   : > { %1362 = vmatpush3.bf16.xpose.msk.msra.mxu0 %vm1361_vm2, %v1360_v21  ;;  %1365 = vmatpush3.bf16.msra.mxu1 %v1360_v21 }
 0x188   : > { %1367 = vmatprep.subr.bf16.mxu0 %v1366_v63 }
 0x213   : > { %v585_v22 = vpop.xlane.xlu0 %584 }
 0x214   : > { %1463 = vrsqrt.f32 %v585_v22  ;;  %vm588_vm3 = vcmp.eq.f32.partialorder %v585_v22, inf  ;;  %v591_v25 = vand.u32 2147483648, %v585_v22  ;;  %vm590_vm4 = vcmp.eq.f32.partialorder %v585_v22, 0.0 }
 0x21e   : > { %v1464_v23 = vpop.eup %1463 }
 0x21f   : > { %v587_v24 = vmul.f32 %v1464_v23, %v585_v22 }
 0x221   : > { %v589_v26 = vsel %vm588_vm3, %v585_v22, %v587_v24 }
 0x222   : > { %v592_v27 = vsel %vm590_vm4, %v591_v25, %v589_v26 }
 0x223   : > { %v593_v28 = vadd.f32 1e-06, %v592_v27 }
 0x225   : > { %1465 = vrcp.f32 %v593_v28 }
 0x22f   : > { %v1466_v29 = vpop.eup %1465 }
 0x230   : > { %v595_v30 = vmul.f32 %v1466_v29, %v579_v13  ;;  %v416_v13 = vld [vmem:[#allocation8 + $0x10] sm:$0xff] }
 0x231   : > { %v1370_v15 = vpack.c.bf16 %v417_v14, %v416_v13 }
 0x232   : > { %1320 = vmatmul.mubr.msk.f32.vlgmr.msra.gmra.mrb[2].mxu0 %vm426_vm1, %v595_v30 }
 0x233   : > { %1369 = vmatpush3.bf16.msra.mxu0 %v1366_v63 }
 0x234   : > { %1371 = vmatprep.subr.bf16.mxu0 %v1370_v15 }
 0x237   : > { %1373 = vmatpush3.bf16.msra.mxu0 %v1370_v15 }
 0x305   : > { %v671_v31 = vpop.f32.mrb[2].mxu0 }
 0x306   : > { %v676_v32 = vsel %vm675_vm5, %v671_v31, -inf  ;;  %v1321_v33 = vpop.f32.mrb[3].mxu0 }
 0x307   : > { %v677_v34 = vrot.slane %v676_v32, 4 }
 0x309   : > { %v678_v35 = vmax.f32 %v676_v32, %v677_v34 }
 0x30b   : > { %v679_v36 = vrot.slane %v678_v35, 2 }
 0x30d   : > { %v680_v37 = vmax.f32 %v678_v35, %v679_v36 }
 0x30f   : > { %v681_v38 = vrot.slane %v680_v37, 1 }
 0x311   : > { %v682_v39 = vmax.f32 %v680_v37, %v681_v38 }
 0x313   : > { %v683_v40 = vsub.f32 %v671_v31, %v682_v39 }
 0x315   : > { %v684_v41 = vmul.f32 1.442695, %v683_v40 }
 0x317   : > { %1467 = vpow2.f32 %v684_v41 }
 0x321   : > { %v1468_v42 = vpop.eup %1467 }
 0x322   : > { %v686_v43 = vsel %vm675_vm5, %v1468_v42, 0.0 }
 0x323   : > { %v687_v44 = vrot.slane %v686_v43, 4 }
 0x325   : > { %v688_v45 = vadd.f32 %v687_v44, %v686_v43 }
 0x327   : > { %v689_v46 = vrot.slane %v688_v45, 2 }
 0x329   : > { %v690_v47 = vadd.f32 %v689_v46, %v688_v45 }
 0x32b   : > { %v691_v48 = vrot.slane %v690_v47, 1 }
 0x32d   : > { %v692_v49 = vadd.f32 %v691_v48, %v690_v47 }
 0x32f   : > { %1469 = vrcp.f32 %v692_v49 }
 0x339   : > { %v1470_v50 = vpop.eup %1469 }
 0x33a   : > { %v694_v51 = vmul.f32 %v1470_v50, %v1468_v42 }
 0x33c   : > { %v695_v52 = vadd.f32 1e-06, %v694_v51  ;;  %997 = vst.msk [vmem:[%s400_s2] sm:$0xff] %vm675_vm5, %v694_v51 }
 0x33e   : > { %v696_v53 = vsel %vm675_vm5, %v695_v52, 0.0 }
 0x33f   : > { %697 = vadd.xlane.f32.xlu0 %v696_v53 }
 0x3cc   : > { %v698_v54 = vpop.xlane.xlu0 %697 }
 0x3cd   : > { %1471 = vrcp.f32 %v698_v54 }
 0x3d7   : > { %v1472_v55 = vpop.eup %1471 }
 0x3d8   : > { %v700_v56 = vmul.f32 %v1472_v55, %v695_v52 }
 0x3da   : > { %1327 = vmatmul.mubr.msk.f32.vlgmr.msra.gmra.mrb[2].mxu1 %vm675_vm5, %v700_v56 }
 0x4ad   : > { %v770_v57 = vpop.f32.mrb[2].mxu1 }
 0x4ae   : > { %v1328_v58 = vpop.f32.mrb[3].mxu1  ;;  %v774_v59 = vmul.f32 %v770_v57, %v770_v57 }
 0x4b0   : > { %v775_v60 = vsel %vm426_vm1, %v774_v59, 0.0 }
 0x4b1   : > { %776 = vadd.xlane.f32.xlu1 %v775_v60 }
 0x4e4   : > { %788 = vxpose.xlu1.b32.start.end [1/1] (short) (narrow) %v694_v51, 16 }
 0x53e   : > { %v777_v0 = vpop.xlane.xlu1 %776 }
 0x53f   : > { %1473 = vrsqrt.f32 %v777_v0  ;;  %vm780_vm6 = vcmp.eq.f32.partialorder %v777_v0, inf  ;;  %v783_v3 = vand.u32 2147483648, %v777_v0  ;;  %vm782_vm7 = vcmp.eq.f32.partialorder %v777_v0, 0.0 }
 0x549   : > { %v1474_v1 = vpop.eup %1473 }
 0x54a   : > { %v779_v2 = vmul.f32 %v1474_v1, %v777_v0 }
 0x54c   : > { %v781_v4 = vsel %vm780_vm6, %v777_v0, %v779_v2 }
 0x54d   : > { %v784_v5 = vsel %vm782_vm7, %v783_v3, %v781_v4 }
 0x54e   : > { %v785_v6 = vadd.f32 1e-06, %v784_v5 }
 0x550   : > { %1475 = vrcp.f32 %v785_v6 }
 0x55a   : > { %v1476_v8 = vpop.eup %1475 }
 0x55b   : > { %v787_v9 = vmul.f32 %v1476_v8, %v770_v57 }
 0x55d   : > { %1329 = vmatprep.subr.mxu1 %v787_v9  ;;  %998 = vst.msk [vmem:[%s407_s10] sm:$0xff] %vm426_vm1, %v787_v9 }
 0x55e   : > { %1330 = vmatpush3.msra.mxu1 %v787_v9 }
 0x564   : > { %v804_v11 = vpop.trf.xlu1 }
 0x565   : > { %1331 = vmatprep.mubr.msk.f32.mxu1 %vm820_vm8, %v804_v11 }
 0x568   : > { %v805_v12 = vpop.trf.xlu1 }
 0x569   : > { %1332 = vmatmul.mubr.msk.f32.vlgmr.msra.gmra.mrb[4].mxu1 %vm820_vm8, %v805_v12 }
 0x63c   : > { %v1333_v16 = vpop.f32.mrb[4].mxu1 }
 0x63d   : > { %v893_v17 = vpop.f32.mrb[5].mxu1  ;;  %v903_v19 = vmax.f32 %v1333_v16, 0.0 }
 0x63e   : > { %v902_v18 = vmax.f32 %v893_v17, 0.0 }
 0x640   : > { %1342 = vmatprep.mubr.msk.f32.mxu0 %vm426_vm1, %v902_v18 }
 0x641   : > { %1343 = vmatmul.mubr.msk.f32.vlgmr.msra.gmra.mrb[4].mxu0 %vm426_vm1, %v903_v19 }
 0x642   : > { %1606 = shalt.err (!%p1603_p7)
}
 0x643   : > { %s1607_s0 = scalar_lea.hbm %s2084_s23, 128  ;;  %s1611_s25 = scalar_lea.hbm %s2203_s7, 256 }
 0x644   : > { %p1608_p2 = scmp.ne.s32.totalorder %s2084_s23, %s1607_s0  ;;  %p1612_p0 = scmp.lt.u32.totalorder %s2084_s23, %s2203_s7 }
 0x645   : > { %p1613_p9 = scmp.lt.u32.totalorder %s1611_s25, %s1607_s0  ;;  %p1615_p1 = scmp.lt.u32.totalorder %s1607_s0, %s2084_s23 }
 0x646   : > { %p1609_p8 = pnand %p1608_p2, %p2240_p13 }
 0x647   : > { %p1614_p12 = por %p1613_p9, %p1612_p0 }
 0x648   : > { %p1610_p11 = pneg %p1609_p8 }
 0x649   : > { %p1616_p6 = por %p1615_p1, %p1614_p12 }
 0x64b   : > { %p1617_p10 = pnand %p1616_p6, %p1610_p11 }
 0x64d   : > { %1620 = shalt.err (!%p1617_p10)
}
 0x64e   : > { %1387 = dma.vmem_to_hbm [thread:$0]  (%p2240_p13), %s1040_s24, 128, %s2084_s23, %s2088_s15  }
 0x64f   : > { %s2113_s14 = scalar_lea.hbm %s2204_s8, %s1261_s20  ;;  %s1052_s4 = sshll.u32 %s407_s10, 4  ;;  %s1053_s4 = int_to_ptr.vmem [resolvable:$true] %s1052_s4 }
 0x650   : > { %s1621_s13 = scalar_lea.vmem %s1053_s4, 128  ;;  %s1743_s0 = smov [#allocation13]  }
 0x651   : > { %p1622_p4 = scmp.ne.s32.totalorder %s1053_s4, %s1621_s13  ;;  %s1625_s21 = sshll.u32 %s1743_s0, 4  ;;  %s1626_s21 = int_to_ptr.vmem [resolvable:$false] %s1625_s21 }
 0x652   : > { %s1627_s11 = scalar_lea.vmem %s1626_s21, 256  ;;  %p1628_p7 = scmp.lt.s32.totalorder %s1053_s4, %s1626_s21 }
 0x653   : > { %p1623_p5 = pnand %p1622_p4, %p2240_p13  ;;  %p1629_p2 = scmp.lt.s32.totalorder %s1627_s11, %s1621_s13 }
 0x655   : > { %p1624_p3 = pneg %p1623_p5  ;;  %p1630_p8 = por %p1629_p2, %p1628_p7 }
 0x657   : > { %p1631_p11 = pnand %p1630_p8, %p1624_p3 }
 0x659   : > { %1634 = shalt.err (!%p1631_p11)
}
 0x65a   : > { %s1635_s29 = scalar_lea.hbm %s2113_s14, 128  ;;  %s1639_s24 = scalar_lea.hbm %s2204_s8, 256 }
 0x65b   : > { %p1636_p0 = scmp.ne.s32.totalorder %s2113_s14, %s1635_s29  ;;  %p1640_p1 = scmp.lt.u32.totalorder %s2113_s14, %s2204_s8 }
 0x65c   : > { %p1641_p6 = scmp.lt.u32.totalorder %s1639_s24, %s1635_s29  ;;  %p1643_p4 = scmp.lt.u32.totalorder %s1635_s29, %s2113_s14 }
 0x65d   : > { %p1637_p9 = pnand %p1636_p0, %p2240_p13 }
 0x65e   : > { %p1642_p10 = por %p1641_p6, %p1640_p1 }
 0x65f   : > { %p1638_p12 = pneg %p1637_p9 }
 0x660   : > { %p1644_p5 = por %p1643_p4, %p1642_p10 }
 0x662   : > { %p1645_p3 = pnand %p1644_p5, %p1638_p12 }
 0x664   : > { %1648 = shalt.err (!%p1645_p3)
}
 0x665   : > { %1388 = dma.vmem_to_hbm [thread:$0]  (%p2240_p13), %s1053_s4, 128, %s2113_s14, %s2088_s15   ;;  %v1253_v20 = vld [vmem:[%s2201_s5] ss:$0 sm:$0xff] }
 0x666   : > { %s1266_s17 = sshll.u32 %s1813_s9, 8  ;;  %s393_s19 = scalar_lea.vmem [#allocation10], %s1236_s18 }
 0x667   : > { %s1023_s13 = sshll.u32 %s393_s19, 4  ;;  %s2146_s4 = scalar_lea.hbm %s2202_s6, %s1266_s17  ;;  %s2148_s13 = int_to_ptr.vmem [resolvable:$true] %s1023_s13 }
 0x668   : > { %s1000_s9 = scalar_lea.sflag [#allocation4], %s2009_s16  ;;  %s1649_s18 = scalar_lea.vmem %s2148_s13, 256 }
 0x669   : > { %p1650_p7 = scmp.ne.s32.totalorder %s2148_s13, %s1649_s18  ;;  %s1744_s0 = smov [#allocation10]  }
 0x66a   : > { %s1653_s21 = sshll.u32 %s1744_s0, 4  ;;  %s1654_s21 = int_to_ptr.vmem [resolvable:$false] %s1653_s21 }
 0x66b   : > { %p1651_p2 = pnand %p1650_p7, %p2240_p13  ;;  %s1655_s11 = scalar_lea.vmem %s1654_s21, 512 }
 0x66c   : > { %p1656_p11 = scmp.lt.s32.totalorder %s2148_s13, %s1654_s21  ;;  %p1657_p0 = scmp.lt.s32.totalorder %s1655_s11, %s1649_s18 }
 0x66d   : > { %p1652_p8 = pneg %p1651_p2 }
 0x66e   : > { %p1658_p9 = por %p1657_p0, %p1656_p11 }
 0x670   : > { %p1659_p12 = pnand %p1658_p9, %p1652_p8 }
 0x714   : > { %v1344_v21 = vpop.f32.mrb[4].mxu0 }
 0x715   : > { %v988_v22 = vadd.f32 %v1344_v21, %v1253_v20  ;;  %v982_v23 = vpop.f32.mrb[5].mxu0 }
 0x716   : > { %v983_v24 = vadd.f32 %v1253_v20, %v982_v23 }
 0x717   : > { %v992_v25 = vadd.f32 %v988_v22, %v2047_v10 }
 0x718   : > { %v991_v26 = vadd.f32 %v983_v24, %v2042_v7 }
 0x719   : > { %v994_v27 = vmax.f32 %v992_v25, 0.0 }
 0x71a   : > { %v993_v28 = vmax.f32 %v991_v26, 0.0 }
 0x71b   : > { %996 = vst.msk [vmem:[%s393_s19 + $0x8] sm:$0xff] %vm426_vm1, %v994_v27 }
 0x71c   : > { %995 = vst.msk [vmem:[%s393_s19] sm:$0xff] %vm426_vm1, %v993_v28 }
 0x71d   : > { %1662 = shalt.err (!%p1659_p12)
}
 0x71e   : > { %s1663_s29 = scalar_lea.hbm %s2146_s4, 256  ;;  %s1667_s24 = scalar_lea.hbm %s2202_s6, 512 }
 0x71f   : > { %p1664_p1 = scmp.ne.s32.totalorder %s2146_s4, %s1663_s29  ;;  %p1668_p4 = scmp.lt.u32.totalorder %s2146_s4, %s2202_s6 }
 0x720   : > { %p1669_p5 = scmp.lt.u32.totalorder %s1667_s24, %s1663_s29  ;;  %p1671_p7 = scmp.lt.u32.totalorder %s1663_s29, %s2146_s4 }
 0x721   : > { %p1665_p6 = pnand %p1664_p1, %p2240_p13 }
 0x722   : > { %p1670_p3 = por %p1669_p5, %p1668_p4 }
 0x723   : > { %p1666_p10 = pneg %p1665_p6 }
 0x724   : > { %p1672_p2 = por %p1671_p7, %p1670_p3 }
 0x726   : > { %p1673_p8 = pnand %p1672_p2, %p1666_p10 }
 0x728   : > { %1676 = shalt.err (!%p1673_p8)
}
 0x729   : > { %s1745_s2 = smov 128   ;;  %s1746_s26 = smov 8  }
 0x72a   : > { %1386 = dma.vmem_to_hbm [thread:$0]  (%p2240_p13), %s2148_s13, 256, %s2146_s4, %s1000_s9, %s1745_s2, %s1745_s2, %s1746_s26  }
 0x72b PF: > { %s1064_s17 = sand.u32 1, %s1719_s27   ;;  %p2241_p11 = scmp.ne.s32.totalorder %s2220_s12, 0 }
 0x72c   : > { %p2242_p0 = scmp.ge.s32.totalorder %s1731_s30, 2  ;;  %s1065_s19 = scalar_lea.sflag [#allocation4], %s1064_s17 }
 0x72e   : > { %p1407_p9 = pnand %p2242_p0, %p2241_p11 }
 0x730   : > { %1710 = dma.done.wait (!%p1407_p9), %s1065_s19, 256  }
 0x731   : > { %1712 = vsyncadd (!%p1407_p9), %s1065_s19, 4294967040  ;;  %s2243_s15 = sadd.s32 4294967294, %s1731_s30  }
 0x732   : > { %s1073_s14 = sand.u32 1, %s2243_s15  }
 0x733   : > { %s1074_s18 = scalar_lea.sflag [#allocation12], %s1073_s14 }
 0x734   : > { %1714 = dma.done.wait (!%p1407_p9), %s1074_s18, 256  }
 0x735   : > { %1716 = vsyncadd (!%p1407_p9), %s1074_s18, 4294967040  ;;  %s2244_s30 = sld [smem:[#allocation21_spill]]  ;;  %s2245_s22 = sld [smem:[#allocation20_spill]] }
 0x736   : > { %s2246_s29 = sld [smem:[#allocation22_spill]]  ;;  %s2247_s27 = smov %s1723_s28 }
 0x73b   : > { %p29_p13 = scmp.ge.s32.totalorder %s2244_s30, 4   ;;  %s2248_s28 = smov %s2245_s22 }
 0x73d   :  { %31 = sbr.rel (!%p29_p13) target bundleno = 14 (0xe), region = 142 }
 0x744   :  { %1088 = vsyncpa [#allocation3], 1 }
 0x745   :  { %1090 = vsyncpa [#allocation3 + $0x1], 1 }
 0x746   :  { %1091 = vsyncpa [#allocation6], 1 }
 0x747   :  { %1093 = vsyncpa [#allocation6 + $0x1], 1 }
 0x748   :  { %1094 = vsyncpa [#allocation9], 1 }
 0x749   :  { %1095 = vsyncpa [#allocation4], 1 }
 0x74a   :  { %1097 = vsyncpa [#allocation4 + $0x1], 1 }
 0x74b   :  { %1098 = vsyncpa [#allocation12], 1 }
 0x74c   :  { %1100 = vsyncpa [#allocation12 + $0x1], 1 }

</bundles_post_ra>
